<compile_context>
chip_gen: v7x
topology: tpu7x:2x2x1
jax: 0.10.0
libtpu: 0.0.40
codegen_flags: <defaults>
</compile_context>

<pallas_src>
import functools
from typing import NamedTuple

import jax
import jax.numpy as jnp
from jax.experimental import pallas as pl
from jax.experimental.pallas import tpu as pltpu


def _round_up(n, m):
    return ((n + m - 1) // m) * m


class MDNMeta(NamedTuple):
    inputd: int
    h1: int
    h2: int
    ncomp: int
    outputd: int
    in_pad: int     # inputd rounded up to 8   (x lane width / w1 rows)
    h1_pad: int     # h1 rounded up to 128
    h2_pad: int     # h2 rounded up to 128
    head_pad: int   # fused head width rounded up to 128 (output lane width)
    lanes: int      # lane width of the packed parameter array
    bias_off: int   # row offset of the bias block inside the packed array
    rows: int       # total rows of the packed parameter array
    n_pi: int
    n_mu: int
    n_l: int
    n_ld: int


# ---------------------------------------------------------------------------
# Kernel
# ---------------------------------------------------------------------------
def _mdn_kernel(x_ref, p_ref, out_ref, *,
                in_pad, h1_pad, h2_pad, head_pad, bias_off,
                n_pi, ld_start, ld_end):
    x = x_ref[...]                                                  # (TB, in_pad)

    # Packed parameter slab (single VMEM-resident array).
    w1 = p_ref[0:in_pad, 0:h1_pad]                                  # (in_pad, h1_pad)
    w2 = p_ref[in_pad:in_pad + h1_pad, 0:h2_pad]                    # (h1_pad, h2_pad)
    wh = p_ref[in_pad + h1_pad:in_pad + h1_pad + h2_pad, 0:head_pad]
    b1 = p_ref[bias_off + 0:bias_off + 1, 0:h1_pad]                 # (1, h1_pad)
    b2 = p_ref[bias_off + 1:bias_off + 2, 0:h2_pad]
    bh = p_ref[bias_off + 2:bias_off + 3, 0:head_pad]

    # Hidden MLP: Linear + tanh, Linear + tanh (zero-padded lanes stay 0).
    z = jnp.tanh(jnp.dot(x, w1, preferred_element_type=jnp.float32) + b1)
    z = jnp.tanh(jnp.dot(z, w2, preferred_element_type=jnp.float32) + b2)

    # Fused head matmul: columns = [pi | mu | L | L_diag | zero-pad] (128 wide).
    head = jnp.dot(z, wh, preferred_element_type=jnp.float32) + bh  # (TB, head_pad)

    col = jax.lax.broadcasted_iota(jnp.int32, head.shape, 1)
    is_pi = col < n_pi
    is_ld = (col >= ld_start) & (col < ld_end)

    # Numerically stable softmax restricted to the pi columns.
    # Mask BEFORE exp so non-pi columns contribute exactly exp(-inf) = 0,
    # then normalize with an exact divide (rows of pi must sum to 1).
    logits = jnp.where(is_pi, head, jnp.float32(-jnp.inf))
    m = jnp.max(logits, axis=-1, keepdims=True)
    e = jnp.exp(logits - m)                                         # 0 on non-pi cols
    denom = jnp.sum(e, axis=-1, keepdims=True)                      # >= 1 always
    pi_vals = e / denom

    # exp() on the L_diagonal columns only; masked pre-exp (exp(0)=1 elsewhere,
    # discarded by the select) so no overflow can appear on other columns.
    ld_vals = jnp.exp(jnp.where(is_ld, head, 0.0))

    out = jnp.where(is_ld, ld_vals, head)
    out = jnp.where(is_pi, pi_vals, out)
    out_ref[...] = out                                              # one dense store


# ---------------------------------------------------------------------------
# Wrapper
# ---------------------------------------------------------------------------
@functools.partial(jax.jit, static_argnames=("meta",))
def mdnn_forward(x, packed, *, meta):
    """Pallas MDN forward. Returns (pi, mu, L, L_diagonal) with the same
    shapes / axis conventions as MDNNTorch.forward."""
    batch = x.shape[0]

    # Batch tiling: single tile for small batches, 512-row tiles otherwise.
    tb = 512 if batch > 512 else max(8, _round_up(batch, 8))
    b_pad = _round_up(batch, tb)
    grid = (b_pad // tb,)

    # Pad batch rows and feature lanes (zeros are inert through the MLP).
    x_p = jnp.zeros((b_pad, meta.in_pad), jnp.float32)
    x_p = x_p.at[:batch, :meta.inputd].set(x.astype(jnp.float32))

    ld_start = meta.n_pi + meta.n_mu + meta.n_l
    ld_end = ld_start + meta.n_ld

    kernel = functools.partial(
        _mdn_kernel,
        in_pad=meta.in_pad, h1_pad=meta.h1_pad, h2_pad=meta.h2_pad,
        head_pad=meta.head_pad, bias_off=meta.bias_off,
        n_pi=meta.n_pi, ld_start=ld_start, ld_end=ld_end)

    flops = 2 * b_pad * (meta.in_pad * meta.h1_pad
                         + meta.h1_pad * meta.h2_pad
                         + meta.h2_pad * meta.head_pad)
    transcendentals = b_pad * (meta.h1_pad + meta.h2_pad + 2 * meta.head_pad)
    bytes_accessed = 4 * (b_pad * meta.in_pad
                          + meta.rows * meta.lanes
                          + b_pad * meta.head_pad)

    out = pl.pallas_call(
        kernel,
        out_shape=jax.ShapeDtypeStruct((b_pad, meta.head_pad), jnp.float32),
        grid=grid,
        in_specs=[
            pl.BlockSpec((tb, meta.in_pad), lambda i: (i, 0)),
            pl.BlockSpec((meta.rows, meta.lanes), lambda i: (0, 0)),  # resident params
        ],
        out_specs=pl.BlockSpec((tb, meta.head_pad), lambda i: (i, 0)),
        compiler_params=pltpu.CompilerParams(
            dimension_semantics=("parallel",)),
        cost_estimate=pl.CostEstimate(
            flops=flops, transcendentals=transcendentals,
            bytes_accessed=bytes_accessed),
    )(x_p, packed)

    # Un-fuse the head slab (same flat column order used when packing).
    c = 0
    pi = out[:batch, c:c + meta.n_pi]; c += meta.n_pi
    mu = out[:batch, c:c + meta.n_mu].reshape(batch, meta.outputd, meta.ncomp); c += meta.n_mu
    n_l_rows = (meta.outputd * (meta.outputd - 1)) // 2
    L = out[:batch, c:c + meta.n_l].reshape(batch, n_l_rows, meta.ncomp); c += meta.n_l
    L_diag = out[:batch, c:c + meta.n_ld].reshape(batch, meta.outputd, meta.ncomp)
    return pi, mu, L, L_diag


# ---------------------------------------------------------------------------
# Parameter construction / packing
# ---------------------------------------------------------------------------
def init_raw_params(key, inputd, hidden_layers, ncomp, outputd):
    """Deterministic synthetic init. Weights stored as (in, out)."""
    h1, h2 = hidden_layers
    n_l = (ncomp * outputd * (outputd - 1)) // 2
    shapes = {
        "w1": (inputd, h1), "b1": (1, h1),
        "w2": (h1, h2), "b2": (1, h2),
        "wpi": (h2, ncomp), "bpi": (1, ncomp),
        "wmu": (h2, ncomp * outputd), "bmu": (1, ncomp * outputd),
        "wl": (h2, n_l), "bl": (1, n_l),
        "wld": (h2, ncomp * outputd), "bld": (1, ncomp * outputd),
    }
    raw = {}
    for (name, shape), k in zip(shapes.items(), jax.random.split(key, len(shapes))):
        raw[name] = (0.1 * jax.random.normal(k, shape)).astype(jnp.float32)
    return raw


def pack_params(raw, *, inputd, hidden_layers, ncomp, outputd):
    """Pack all weights/biases into one lane-padded (rows, lanes) array.
    Head column order: [pi | mu | L | L_diag].  When porting trained
    MDNNTorch weights, transpose each torch weight to (in, out) first and
    keep this same column order so the wrapper reshapes stay correct."""
    h1, h2 = hidden_layers
    n_pi = ncomp
    n_mu = ncomp * outputd
    n_l = (ncomp * outputd * (outputd - 1)) // 2
    n_ld = ncomp * outputd
    head = n_pi + n_mu + n_l + n_ld

    in_pad = _round_up(inputd, 8)
    h1_pad = _round_up(h1, 128)
    h2_pad = _round_up(h2, 128)
    head_pad = _round_up(head, 128)
    lanes = max(h1_pad, h2_pad, head_pad)
    bias_off = in_pad + h1_pad + h2_pad
    rows = bias_off + 8

    p = jnp.zeros((rows, lanes), jnp.float32)
    p = p.at[:inputd, :h1].set(raw["w1"])
    p = p.at[in_pad:in_pad + h1, :h2].set(raw["w2"])
    w_head = jnp.concatenate([raw["wpi"], raw["wmu"], raw["wl"], raw["wld"]], axis=1)
    p = p.at[in_pad + h1_pad:in_pad + h1_pad + h2, :head].set(w_head)
    b_head = jnp.concatenate([raw["bpi"], raw["bmu"], raw["bl"], raw["bld"]], axis=1)
    p = p.at[bias_off + 0, :h1].set(raw["b1"][0])
    p = p.at[bias_off + 1, :h2].set(raw["b2"][0])
    p = p.at[bias_off + 2, :head].set(b_head[0])

    meta = MDNMeta(inputd=inputd, h1=h1, h2=h2, ncomp=ncomp, outputd=outputd,
                   in_pad=in_pad, h1_pad=h1_pad, h2_pad=h2_pad,
                   head_pad=head_pad, lanes=lanes, bias_off=bias_off, rows=rows,
                   n_pi=n_pi, n_mu=n_mu, n_l=n_l, n_ld=n_ld)
    return p, meta


# ---------------------------------------------------------------------------
# Pure-JAX reference (mirrors MDNNTorch.forward) for correctness check
# ---------------------------------------------------------------------------
def mdnn_reference(x, raw, *, n_outputs, n_gaussians):
    z = jnp.tanh(x @ raw["w1"] + raw["b1"])
    z = jnp.tanh(z @ raw["w2"] + raw["b2"])
    pi = jax.nn.softmax(z @ raw["wpi"] + raw["bpi"], axis=-1)
    mu = (z @ raw["wmu"] + raw["bmu"]).reshape(-1, n_outputs, n_gaussians)
    L = (z @ raw["wl"] + raw["bl"]).reshape(
        -1, (n_outputs * (n_outputs - 1)) // 2, n_gaussians)
    L_d = jnp.exp(z @ raw["wld"] + raw["bld"]).reshape(-1, n_outputs, n_gaussians)
    return pi, mu, L, L_d


if __name__ == "__main__":
    # Small config consistent with the module's __init__:
    #   hidden_layers=[32, 32], ncomp=8, inputd=4, outputd=3
    batch = 8
    inputd = 4
    hidden_layers = [32, 32]
    ncomp = 8
    outputd = 3

    key = jax.random.PRNGKey(0)
    k_x, k_p = jax.random.split(key)
    x = jax.random.normal(k_x, (batch, inputd), dtype=jnp.float32)
    raw = init_raw_params(k_p, inputd, hidden_layers, ncomp, outputd)
    packed, meta = pack_params(raw, inputd=inputd, hidden_layers=hidden_layers,
                               ncomp=ncomp, outputd=outputd)

    pi, mu, L, L_d = mdnn_forward(x, packed, meta=meta)
    jax.block_until_ready((pi, mu, L, L_d))

    # shapes match MDNNTorch.forward
    assert pi.shape == (batch, ncomp)
    assert mu.shape == (batch, outputd, ncomp)
    assert L.shape == (batch, (outputd * (outputd - 1)) // 2, ncomp)
    assert L_d.shape == (batch, outputd, ncomp)
    # softmax rows sum to 1 (exact normalization in-kernel)
    assert bool(jnp.allclose(jnp.sum(pi, axis=-1), 1.0, atol=1e-4))

    # numerical check vs pure-JAX reference
    pi_r, mu_r, L_r, Ld_r = mdnn_reference(
        x, raw, n_outputs=outputd, n_gaussians=ncomp)
    assert bool(jnp.allclose(pi, pi_r, atol=2e-3, rtol=2e-3))
    assert bool(jnp.allclose(mu, mu_r, atol=2e-3, rtol=2e-3))
    assert bool(jnp.allclose(L, L_r, atol=2e-3, rtol=2e-3))
    assert bool(jnp.allclose(L_d, Ld_r, atol=2e-3, rtol=2e-3))

    print("KERNEL_OK")
</pallas_src>

<mosaic_0001>
module attributes {stable_mosaic.version = 11 : i64} {
  func.func @_mdn_kernel(%arg0: i32, %arg1: memref<8x8xf32, #tpu.memory_space<vmem>>, %arg2: memref<272x128xf32, #tpu.memory_space<vmem>>, %arg3: memref<8x128xf32, #tpu.memory_space<vmem>>) attributes {dimension_semantics = [#tpu.dimension_semantics<parallel>], iteration_bounds = array<i64: 1>, scalar_prefetch = 0 : i64, scratch_operands = 0 : i64, tpu.core_type = #tpu.core_type<tc>, window_params = [{transform_indices = @transform_0, window_bounds = array<i64: 8, 8>}, {pipeline_mode = #tpu.pipeline_mode<synchronous>, transform_indices = @transform_1, window_bounds = array<i64: 272, 128>}, {transform_indices = @transform_2, window_bounds = array<i64: 8, 128>}]} {
    %c0 = arith.constant 0 : index
    %c0_0 = arith.constant 0 : index
    %0 = vector.load %arg1[%c0, %c0_0] : memref<8x8xf32, #tpu.memory_space<vmem>>, vector<8x8xf32>
    %c0_1 = arith.constant 0 : index
    %c0_2 = arith.constant 0 : index
    %1 = vector.load %arg2[%c0_1, %c0_2] : memref<272x128xf32, #tpu.memory_space<vmem>>, vector<8x128xf32>
    %c8 = arith.constant 8 : index
    %c0_3 = arith.constant 0 : index
    %2 = vector.load %arg2[%c8, %c0_3] : memref<272x128xf32, #tpu.memory_space<vmem>>, vector<128x128xf32>
    %c136 = arith.constant 136 : index
    %c0_4 = arith.constant 0 : index
    %3 = vector.load %arg2[%c136, %c0_4] : memref<272x128xf32, #tpu.memory_space<vmem>>, vector<128x128xf32>
    %c264 = arith.constant 264 : index
    %c0_5 = arith.constant 0 : index
    %4 = vector.load %arg2[%c264, %c0_5] : memref<272x128xf32, #tpu.memory_space<vmem>>, vector<1x128xf32>
    %c265 = arith.constant 265 : index
    %c0_6 = arith.constant 0 : index
    %5 = vector.load %arg2[%c265, %c0_6] : memref<272x128xf32, #tpu.memory_space<vmem>>, vector<1x128xf32>
    %c266 = arith.constant 266 : index
    %c0_7 = arith.constant 0 : index
    %6 = vector.load %arg2[%c266, %c0_7] : memref<272x128xf32, #tpu.memory_space<vmem>>, vector<1x128xf32>
    %cst = arith.constant dense<0.000000e+00> : vector<8x128xf32>
    %7 = tpu.matmul %0, %1, %cst {dimension_numbers = #tpu.dot_dimension_numbers<[1], [0], [0], [1], [0, 0, 1, 1], [], []>} : vector<8x8xf32>, vector<8x128xf32>, vector<8x128xf32> -> vector<8x128xf32>
    %8 = vector.broadcast %4 : vector<1x128xf32> to vector<8x128xf32>
    %9 = arith.addf %7, %8 : vector<8x128xf32>
    %10 = math.tanh %9 : vector<8x128xf32>
    %cst_8 = arith.constant dense<0.000000e+00> : vector<8x128xf32>
    %11 = tpu.matmul %10, %2, %cst_8 {dimension_numbers = #tpu.dot_dimension_numbers<[1], [0], [0], [1], [0, 0, 1, 1], [], []>} : vector<8x128xf32>, vector<128x128xf32>, vector<8x128xf32> -> vector<8x128xf32>
    %12 = vector.broadcast %5 : vector<1x128xf32> to vector<8x128xf32>
    %13 = arith.addf %11, %12 : vector<8x128xf32>
    %14 = math.tanh %13 : vector<8x128xf32>
    %cst_9 = arith.constant dense<0.000000e+00> : vector<8x128xf32>
    %15 = tpu.matmul %14, %3, %cst_9 {dimension_numbers = #tpu.dot_dimension_numbers<[1], [0], [0], [1], [0, 0, 1, 1], [], []>} : vector<8x128xf32>, vector<128x128xf32>, vector<8x128xf32> -> vector<8x128xf32>
    %16 = vector.broadcast %6 : vector<1x128xf32> to vector<8x128xf32>
    %17 = arith.addf %15, %16 : vector<8x128xf32>
    %18 = tpu.iota {dimensions = array<i32: 1>} : vector<8x128xi32>
    %c8_i32 = arith.constant 8 : i32
    %19 = vector.broadcast %c8_i32 : i32 to vector<8x128xi32>
    %20 = arith.cmpi slt, %18, %19 : vector<8x128xi32>
    %c56_i32 = arith.constant 56 : i32
    %21 = vector.broadcast %c56_i32 : i32 to vector<8x128xi32>
    %22 = arith.cmpi sge, %18, %21 : vector<8x128xi32>
    %c80_i32 = arith.constant 80 : i32
    %23 = vector.broadcast %c80_i32 : i32 to vector<8x128xi32>
    %24 = arith.cmpi slt, %18, %23 : vector<8x128xi32>
    %25 = arith.andi %22, %24 : vector<8x128xi1>
    %cst_10 = arith.constant 0xFF800000 : f32
    %26 = vector.broadcast %cst_10 : f32 to vector<8x128xf32>
    %27 = arith.select %20, %17, %26 : vector<8x128xi1>, vector<8x128xf32>
    %cst_11 = arith.constant dense<0xFF800000> : vector<8xf32>
    %28 = vector.multi_reduction <maximumf>, %27, %cst_11 [1] : vector<8x128xf32> to vector<8xf32>
    %29 = vector.shape_cast %28 : vector<8xf32> to vector<8x1xf32>
    %30 = vector.broadcast %29 : vector<8x1xf32> to vector<8x128xf32>
    %31 = arith.subf %27, %30 : vector<8x128xf32>
    %32 = math.exp %31 : vector<8x128xf32>
    %cst_12 = arith.constant dense<0.000000e+00> : vector<8xf32>
    %33 = vector.multi_reduction <add>, %32, %cst_12 [1] : vector<8x128xf32> to vector<8xf32>
    %34 = vector.shape_cast %33 : vector<8xf32> to vector<8x1xf32>
    %35 = vector.broadcast %34 : vector<8x1xf32> to vector<8x128xf32>
    %36 = arith.divf %32, %35 : vector<8x128xf32>
    %cst_13 = arith.constant 0.000000e+00 : f32
    %37 = vector.broadcast %cst_13 : f32 to vector<8x128xf32>
    %38 = arith.select %25, %17, %37 : vector<8x128xi1>, vector<8x128xf32>
    %39 = math.exp %38 : vector<8x128xf32>
    %40 = arith.select %25, %39, %17 : vector<8x128xi1>, vector<8x128xf32>
    %41 = arith.select %20, %36, %40 : vector<8x128xi1>, vector<8x128xf32>
    %c0_14 = arith.constant 0 : index
    %c0_15 = arith.constant 0 : index
    %42 = vector.load %arg3[%c0_14, %c0_15] : memref<8x128xf32, #tpu.memory_space<vmem>>, vector<8x128xf32>
    tpu.vector_store %arg3[%c0_14, %c0_15], %41 {strides = array<i32>} : memref<8x128xf32, #tpu.memory_space<vmem>>, vector<8x128xf32>,
    return
  }
  func.func @transform_0(%arg0: i32) -> (i32, i32) {
    %c0_i32 = arith.constant 0 : i32
    %c0_i32_0 = arith.constant 0 : i32
    return %arg0, %c0_i32 : i32, i32
  }
  func.func @transform_1(%arg0: i32) -> (i32, i32) {
    %c0_i32 = arith.constant 0 : i32
    %c0_i32_0 = arith.constant 0 : i32
    %c0_i32_1 = arith.constant 0 : i32
    return %c0_i32, %c0_i32_0 : i32, i32
  }
  func.func @transform_2(%arg0: i32) -> (i32, i32) {
    %c0_i32 = arith.constant 0 : i32
    %c0_i32_0 = arith.constant 0 : i32
    return %arg0, %c0_i32 : i32, i32
  }
}

</mosaic_0001>

<bundles_post_ra>
// kernel: mdnn_forward.1
= control target key start
LH: loop header
LB: loop body
LE: loop exit
PB: predicated region body
PF: predicated region fallthrough
CT: control target
= control target key end

     0   :  { %7 = vsyncpa [#allocation3], 0  ;;  %s520_s9 = smov [#allocation2]   ;;  %s588_s0 = inlined_call_operand.vmem [shape: f32[8,8], index: 0, kind: input, shape index: {}]   ;;  %s589_s1 = inlined_call_operand.hbm [shape: f32[272,128], index: 1, kind: input, shape index: {}]   ;;  %s590_s2 = inlined_call_operand.vmem [shape: f32[8,128], index: 2, kind: output, shape index: {}]  }
   0x1   :  { %s15_s10 = sshll.u32 %s520_s9, 4  ;;  %s496_s13 = scalar_lea.hbm %s589_s1, 4352  ;;  %s16_s10 = int_to_ptr.vmem [resolvable:$true] %s15_s10 }
   0x2   :  { %p497_p0 = scmp.ne.s32.totalorder %s589_s1, %s496_s13  ;;  %p500_p1 = scmp.lt.u32.totalorder %s496_s13, %s589_s1 }
   0x4   :  { %p502_p2 = pnand %p500_p1, %p497_p0 }
   0x6   :  { %505 = shalt.err (!%p502_p2)
}
   0x7   :  { %s506_s18 = scalar_lea.vmem %s16_s10, 4352  ;;  %p511_p4 = scmp.lt.s32.totalorder %s16_s10, %s16_s10 }
   0x8   :  { %p507_p3 = scmp.ne.s32.totalorder %s16_s10, %s506_s18  ;;  %p512_p5 = scmp.lt.s32.totalorder %s506_s18, %s506_s18 }
   0xa   :  { %p513_p6 = por %p512_p5, %p511_p4 }
   0xc   :  { %p514_p7 = pnand %p513_p6, %p507_p3 }
   0xe   :  { %517 = shalt.err (!%p514_p7)
}
   0xf   :  { %s521_s19 = smov 128   ;;  %s522_s20 = smov 8  }
  0x10   :  { %21 = dma.hbm_to_vmem [thread:$0]  %s589_s1, 4352, %s16_s10, [#allocation3], %s521_s19, %s521_s19, %s522_s20  }
  0x11   :  { %518 = dma.done.wait [#allocation3], 4352  }
  0x12   :  { %519 = vsyncadd [#allocation3], 4294962944  ;;  %v523_v0 = vmov 0.0   ;;  %vm524_vm0 = vmmov 0   ;;  %v525_v1 = vmov 0.0|0.0   ;;  %vm66_vm1 = vcmask 64512  }
  0x13   :  { %357 = vmatprep.subr.mxu0 %v523_v0  ;;  %359 = vmatprep.mubr.msk.f32.mxu0 %vm524_vm0, %v523_v0  ;;  %v26_v2 = vld [vmem:[#allocation2] sm:$0xff]  ;;  %v27_v4 = vld [vmem:[#allocation2 + $0x8] sm:$0xff]  ;;  %v28_v5 = vld [vmem:[#allocation2 + $0x10] sm:$0xff]  ;;  %v290_v62 = vlaneseq }
  0x14   :  { %432 = vmatprep.subr.bf16.mxu1 %v525_v1  ;;  %394 = vmatprep.mubr.msk.f32.mxu1 %vm524_vm0, %v523_v0  ;;  %v25_v3 = vld [vmem:[%s588_s0] sm:$0xff]  ;;  %v29_v6 = vld [vmem:[#allocation2 + $0x18] sm:$0xff]  ;;  %v433_v8 = vpack.c.bf16 %v28_v5, %v27_v4  ;;  %v31_v10 = vld [vmem:[#allocation2 + $0x28] sm:$0xff] }
  0x15   :  { %358 = vmatpush3.msra.mxu0 %v26_v2  ;;  %v30_v7 = vld [vmem:[#allocation2 + $0x20] sm:$0xff]  ;;  %v32_v11 = vld [vmem:[#allocation2 + $0x30] sm:$0xff]  ;;  %v33_v13 = vld [vmem:[#allocation2 + $0x38] sm:$0xff]  ;;  %v291_v63 = vand.u32 127, %v290_v62 }
  0x16   :  { %360 = vmatmul.mubr.msk.f32.vlgmr.msra.gmra.mrb[0].mxu0 %vm66_vm1, %v25_v3  ;;  %456 = vmatprep.subr.bf16.mxu0 %v525_v1  ;;  %v436_v9 = vpack.c.bf16 %v30_v7, %v29_v6  ;;  %v439_v12 = vpack.c.bf16 %v32_v11, %v31_v10  ;;  %v34_v14 = vld [vmem:[#allocation2 + $0x40] sm:$0xff]  ;;  %v35_v16 = vld [vmem:[#allocation2 + $0x48] sm:$0xff]  ;;  %v36_v17 = vld [vmem:[#allocation2 + $0x50] sm:$0xff] }
  0x17   :  { %429 = vmatprep.mubr.msk.f32.mxu0 %vm524_vm0, %v523_v0  ;;  %434 = vmatpush3.bf16.msra.mxu1 %v433_v8  ;;  %v442_v15 = vpack.c.bf16 %v34_v14, %v33_v13  ;;  %v445_v18 = vpack.c.bf16 %v36_v17, %v35_v16  ;;  %v37_v19 = vld [vmem:[#allocation2 + $0x58] sm:$0xff]  ;;  %v38_v20 = vld [vmem:[#allocation2 + $0x60] sm:$0xff]  ;;  %v39_v22 = vld [vmem:[#allocation2 + $0x68] sm:$0xff]  ;;  %vm293_vm2 = vcmp.ge.s32.totalorder %v291_v63, 56  ;;  %vm294_vm3 = vcmp.lt.s32.totalorder %v291_v63, 80 }
  0x18   :  { %435 = vmatprep.subr.bf16.mxu1 %v525_v1  ;;  %v448_v21 = vpack.c.bf16 %v38_v20, %v37_v19  ;;  %v40_v23 = vld [vmem:[#allocation2 + $0x70] sm:$0xff]  ;;  %v41_v25 = vld [vmem:[#allocation2 + $0x78] sm:$0xff]  ;;  %v42_v26 = vld [vmem:[#allocation2 + $0x80] sm:$0xff]  ;;  %vm292_vm5 = vcmp.lt.s32.totalorder %v291_v63, 8 }
  0x19   :  { %v451_v24 = vpack.c.bf16 %v40_v23, %v39_v22  ;;  %v454_v27 = vpack.c.bf16 %v42_v26, %v41_v25  ;;  %v43_v28 = vld [vmem:[#allocation2 + $0x88] sm:$0xff]  ;;  %v44_v29 = vld [vmem:[#allocation2 + $0x90] sm:$0xff]  ;;  %v45_v30 = vld [vmem:[#allocation2 + $0x98] sm:$0xff] }
  0x1a   :  { %v457_v31 = vpack.c.bf16 %v44_v29, %v43_v28  ;;  %v46_v32 = vld [vmem:[#allocation2 + $0xa0] sm:$0xff]  ;;  %v47_v34 = vld [vmem:[#allocation2 + $0xa8] sm:$0xff]  ;;  %v48_v35 = vld [vmem:[#allocation2 + $0xb0] sm:$0xff] }
  0x1b   :  { %437 = vmatpush3.bf16.msra.mxu1 %v436_v9  ;;  %v460_v33 = vpack.c.bf16 %v46_v32, %v45_v30  ;;  %v463_v36 = vpack.c.bf16 %v48_v35, %v47_v34  ;;  %v49_v37 = vld [vmem:[#allocation2 + $0xb8] sm:$0xff]  ;;  %v50_v38 = vld [vmem:[#allocation2 + $0xc0] sm:$0xff]  ;;  %v51_v40 = vld [vmem:[#allocation2 + $0xc8] sm:$0xff] }
  0x1c   :  { %438 = vmatprep.subr.bf16.mxu1 %v525_v1  ;;  %458 = vmatpush3.bf16.msra.mxu0 %v457_v31  ;;  %v466_v39 = vpack.c.bf16 %v50_v38, %v49_v37  ;;  %v52_v41 = vld [vmem:[#allocation2 + $0xd0] sm:$0xff]  ;;  %v317_v43 = vld [vmem:[#allocation2 + $0x108] ss:$0 sm:$0xff]  ;;  %v53_v48 = vld [vmem:[#allocation2 + $0xd8] sm:$0xff] }
  0x1d   :  { %459 = vmatprep.subr.bf16.mxu0 %v525_v1  ;;  %v469_v42 = vpack.c.bf16 %v52_v41, %v51_v40  ;;  %v54_v49 = vld [vmem:[#allocation2 + $0xe0] sm:$0xff]  ;;  %v55_v51 = vld [vmem:[#allocation2 + $0xe8] sm:$0xff]  ;;  %v56_v52 = vld [vmem:[#allocation2 + $0xf0] sm:$0xff] }
  0x1e   :  { %v472_v50 = vpack.c.bf16 %v54_v49, %v53_v48  ;;  %v475_v53 = vpack.c.bf16 %v56_v52, %v55_v51  ;;  %v57_v54 = vld [vmem:[#allocation2 + $0xf8] sm:$0xff]  ;;  %v58_v55 = vld [vmem:[#allocation2 + $0x100] sm:$0xff]  ;;  %v319_v57 = vld [vmem:[#allocation2 + $0x109] ss:$0 sm:$0xff] }
  0x1f   :  { %440 = vmatpush3.bf16.msra.mxu1 %v439_v12  ;;  %v478_v56 = vpack.c.bf16 %v58_v55, %v57_v54  ;;  %v320_v0 = vld [vmem:[#allocation2 + $0x10a] ss:$0 sm:$0xff]  ;;  %vm575_vm4 = vmand %vm293_vm2, %vm294_vm3 }
  0x20   :  { %441 = vmatprep.subr.bf16.mxu1 %v525_v1  ;;  %461 = vmatpush3.bf16.msra.mxu0 %v460_v33 }
  0x21   :  { %462 = vmatprep.subr.bf16.mxu0 %v525_v1 }
  0x23   :  { %443 = vmatpush3.bf16.msra.mxu1 %v442_v15 }
  0x24   :  { %444 = vmatprep.subr.bf16.mxu1 %v525_v1  ;;  %464 = vmatpush3.bf16.msra.mxu0 %v463_v36 }
  0x25   :  { %465 = vmatprep.subr.bf16.mxu0 %v525_v1 }
  0x27   :  { %446 = vmatpush3.bf16.msra.mxu1 %v445_v18 }
  0x28   :  { %447 = vmatprep.subr.bf16.mxu1 %v525_v1  ;;  %467 = vmatpush3.bf16.msra.mxu0 %v466_v39 }
  0x29   :  { %468 = vmatprep.subr.bf16.mxu0 %v525_v1 }
  0x2b   :  { %449 = vmatpush3.bf16.msra.mxu1 %v448_v21 }
  0x2c   :  { %450 = vmatprep.subr.bf16.mxu1 %v525_v1  ;;  %470 = vmatpush3.bf16.msra.mxu0 %v469_v42 }
  0x2d   :  { %471 = vmatprep.subr.bf16.mxu0 %v525_v1 }
  0x2f   :  { %452 = vmatpush3.bf16.msra.mxu1 %v451_v24 }
  0x30   :  { %453 = vmatprep.subr.bf16.mxu1 %v525_v1  ;;  %473 = vmatpush3.bf16.msra.mxu0 %v472_v50 }
  0x31   :  { %474 = vmatprep.subr.bf16.mxu0 %v525_v1 }
  0x33   :  { %455 = vmatpush3.bf16.msra.mxu1 %v454_v27 }
  0x34   :  { %476 = vmatpush3.bf16.msra.mxu0 %v475_v53 }
  0x35   :  { %477 = vmatprep.subr.bf16.mxu0 %v525_v1 }
  0x38   :  { %479 = vmatpush3.bf16.msra.mxu0 %v478_v56 }
  0xe9   :  { %v136_v44 = vpop.f32.mrb[0].mxu0 }
  0xea   :  { %v137_v45 = vadd.f32 %v317_v43, %v136_v44  ;;  %v361_v46 = vpop.f32.mrb[1].mxu0 }
  0xec   :  { %486 = vtanh.f32 %v137_v45 }
  0xf6   :  { %v487_v47 = vpop.eup %486 }
  0xf7   :  { %395 = vmatmul.mubr.f32.vlgmr.msra.gmra.mrb[0].mxu1 %v487_v47 }
 0x1ca   :  { %v211_v58 = vpop.f32.mrb[0].mxu1 }
 0x1cb   :  { %v212_v59 = vadd.f32 %v319_v57, %v211_v58  ;;  %v396_v60 = vpop.f32.mrb[1].mxu1 }
 0x1cd   :  { %488 = vtanh.f32 %v212_v59 }
 0x1d7   :  { %v489_v61 = vpop.eup %488 }
 0x1d8   :  { %430 = vmatmul.mubr.f32.vlgmr.msra.gmra.mrb[2].mxu0 %v489_v61 }
 0x2ab   :  { %v286_v2 = vpop.f32.mrb[2].mxu0 }
 0x2ac   :  { %v287_v1 = vadd.f32 %v320_v0, %v286_v2  ;;  %v431_v4 = vpop.f32.mrb[3].mxu0 }
 0x2ae   :  { %v306_v5 = vsel %vm575_vm4, %v287_v1, 0.0  ;;  %v296_v6 = vsel %vm292_vm5, %v287_v1, -inf }
 0x2af   :  { %v307_v7 = vmul.f32 1.442695, %v306_v5  ;;  %297 = vmax.xlane.f32.xlu0 %v296_v6 }
 0x2b1   :  { %490 = vpow2.f32 %v307_v7 }
 0x2bb   :  { %v491_v8 = vpop.eup %490 }
 0x2bc   :  { %v309_v9 = vsel %vm575_vm4, %v491_v8, %v287_v1 }
 0x33c   :  { %v298_v10 = vpop.xlane.xlu0 %297 }
 0x33d   :  { %v299_v11 = vsub.f32 %v296_v6, %v298_v10 }
 0x33f   :  { %v300_v12 = vmul.f32 1.442695, %v299_v11 }
 0x341   :  { %492 = vpow2.f32 %v300_v12 }
 0x34b   :  { %v493_v13 = vpop.eup %492 }
 0x34c   :  { %302 = vadd.xlane.f32.xlu0 %v493_v13 }
 0x3d9   :  { %v303_v14 = vpop.xlane.xlu0 %302 }
 0x3da   :  { %494 = vrcp.f32 %v303_v14 }
 0x3e4   :  { %v495_v15 = vpop.eup %494 }
 0x3e5   :  { %v305_v16 = vmul.f32 %v495_v15, %v493_v13 }
 0x3e7   :  { %v310_v17 = vsel %vm292_vm5, %v305_v16, %v309_v9 }
 0x3e8   :  { %311 = vst [vmem:[%s590_s2] sm:$0xff] %v310_v17 }
 0x3e9   :  { %316 = vsyncpa [#allocation3], 1 }

</bundles_post_ra>
